<compile_context>
chip_gen: v7x
topology: tpu7x:2x2x1
jax: 0.10.0
libtpu: 0.0.40
codegen_flags: <defaults>
</compile_context>

<pallas_src>
import functools

import jax
import jax.numpy as jnp
from jax import lax
from jax.experimental import pallas as pl
from jax.experimental.pallas import tpu as pltpu


# ------------------------------- kernel ------------------------------------


def res_layer_kernel(x_ref, w_ref, b_ref, o_ref, *, feat_axis):
    """One (tb, tn) output tile of  x + Mish(x @ W^T + b).

    x_ref: (tb, D)  batch-row tile (full input-feature width)
    w_ref: (tn, D)  weight tile in PyTorch (out, in) layout (no transpose)
    b_ref: (1, tn)  bias tile
    o_ref: (tb, tn) lane-dense output tile
    """
    tn = o_ref.shape[1]
    d_in = x_ref.shape[1]

    x = x_ref[...]  # native dtype straight to the MXU

    # z = x @ W^T + b : contract x dim-1 with w dim-1, f32 accumulation.
    z = lax.dot_general(
        x, w_ref[...],
        dimension_numbers=(((1,), (1,)), ((), ())),
        preferred_element_type=jnp.float32,
    ) + b_ref[...].astype(jnp.float32)

    # Mish(z) = z * tanh(softplus(z)) = z * u / (u + 2), u = t*(t+2),
    # t = exp(min(z, 20)).  The clamp keeps exp finite; for z >= 20, u is so
    # large that u/(u+2) == 1 exactly in f32, matching torch's softplus
    # threshold-20 passthrough, so no extra select is needed.
    t = jnp.exp(jnp.minimum(z, 20.0))
    u = t * (t + 2.0)
    mish = z * (u * pl.reciprocal(u + 2.0, approx=True))

    if tn == d_in:
        x_res = x  # single output-feature tile: residual is the whole x tile
    else:
        col = pl.multiple_of(pl.program_id(feat_axis) * tn, tn)
        x_res = x_ref[:, pl.ds(col, tn)]

    o_ref[...] = (x_res.astype(jnp.float32) + mish).astype(o_ref.dtype)


# --------------------------- planning helpers -------------------------------


def _vmem_budget_bytes():
    """Generation-aware VMEM budget: physical capacity minus headroom."""
    cap = None
    try:
        cap = int(pltpu.get_tpu_info().vmem_capacity_bytes)
    except Exception:
        cap = None
    if cap is None or cap <= 0:
        cap = 64 * 1024 * 1024  # unknown: assume the smallest (v7x per-TC VMEM)
    headroom = 16 * 1024 * 1024  # Mosaic internal scratch / semaphores / temps
    # v5e/v6e (128 MiB) -> 100 MiB; v7x (64 MiB) -> 48 MiB.
    return int(max(32 * 1024 * 1024, min(cap - headroom, 100 * 1024 * 1024)))


def _sublane(dtype):
    return {4: 8, 2: 16, 1: 32}.get(jnp.dtype(dtype).itemsize, 8)


def _batch_tile_candidates(batch, sub):
    cands = [t for t in (1024, 512, 256, 128, 64, 32, 16, 8)
             if t % sub == 0 and batch % t == 0]
    return cands or [batch]  # full-extent block is always legal


def _resident_plan(B, D, xbytes, wbytes, sub, budget):
    """Largest batch tile for which the fully-resident weight plan fits."""
    w_bytes = D * D * wbytes
    for tb in _batch_tile_candidates(B, sub):
        use = (w_bytes                     # weight, single-buffered
               + D * 4                     # bias
               + 2 * tb * D * xbytes       # x double buffer
               + 2 * tb * D * xbytes       # out double buffer
               + 4 * tb * D * 4)           # f32 z / epilogue temporaries (slack)
        if use <= budget:
            return tb
    return None


def _streamed_plan(B, D, xbytes, wbytes, sub, budget):
    """Pick (tb, tn) for the streamed plan, minimizing total HBM read traffic."""
    # Prefer 256-multiples so the 256x256 MXUs on v6e/v7x stay full.
    tn_cands = [t for t in (2048, 1024, 768, 512, 256, 128)
                if D % t == 0 and t < D]
    if not tn_cands:
        return None
    best = None
    for tn in tn_cands:
        for tb in _batch_tile_candidates(B, sub):
            use = (2 * tb * D * xbytes      # x tile (full K) double buffer
                   + 2 * tn * D * wbytes    # weight tile double buffer
                   + 2 * tn * 4             # bias tiles
                   + 2 * tb * tn * xbytes   # out double buffer
                   + 4 * tb * tn * 4)       # f32 temporaries (slack)
            if use > budget:
                continue
            n_i, n_j = B // tb, D // tn
            t_i_outer = B * D * xbytes + n_i * D * D * wbytes   # weight re-read
            t_j_outer = n_j * B * D * xbytes + D * D * wbytes   # x re-read
            key = (-min(t_i_outer, t_j_outer), tb * tn)
            if best is None or key > best[0]:
                best = (key, tb, tn)
            break  # tb candidates are descending: first fit is the largest
    if best is None:
        return None
    return best[1], best[2]


# ------------------------------ wrapper -------------------------------------


def _res_layer_call(x, w, b2, *, tb, tn, budget, order):
    B, D = x.shape
    n_i, n_j = B // tb, D // tn
    xb = jnp.dtype(x.dtype).itemsize
    wb = jnp.dtype(w.dtype).itemsize

    if n_j == 1:
        # Resident weight: constant index_map + single-buffering keeps exactly
        # one copy of the (D, D) weight and the bias in VMEM for the whole call.
        grid = (n_i,)
        in_specs = [
            pl.BlockSpec((tb, D), lambda i: (i, 0)),
            pl.BlockSpec((D, D), lambda i: (0, 0), pipeline_mode=pl.Buffered(1)),
            pl.BlockSpec((1, D), lambda i: (0, 0), pipeline_mode=pl.Buffered(1)),
        ]
        out_specs = pl.BlockSpec((tb, D), lambda i: (i, 0))
        dims = ("parallel",)
        feat_axis = 0  # unused: tn == D branch in the kernel
        bytes_accessed = B * D * xb + D * D * wb + D * 4 + B * D * xb
    elif order == "i_outer":
        # Batch-outer: x tile read once, weight tiles re-read per batch tile.
        grid = (n_i, n_j)
        in_specs = [
            pl.BlockSpec((tb, D), lambda i, j: (i, 0)),
            pl.BlockSpec((tn, D), lambda i, j: (j, 0)),
            pl.BlockSpec((1, tn), lambda i, j: (0, j)),
        ]
        out_specs = pl.BlockSpec((tb, tn), lambda i, j: (i, j))
        dims = ("parallel", "parallel")
        feat_axis = 1
        bytes_accessed = B * D * xb + n_i * D * D * wb + D * 4 + B * D * xb
    else:
        # Feature-outer: weight read once, x tiles re-read per feature tile.
        grid = (n_j, n_i)
        in_specs = [
            pl.BlockSpec((tb, D), lambda j, i: (i, 0)),
            pl.BlockSpec((tn, D), lambda j, i: (j, 0)),
            pl.BlockSpec((1, tn), lambda j, i: (0, j)),
        ]
        out_specs = pl.BlockSpec((tb, tn), lambda j, i: (i, j))
        dims = ("parallel", "parallel")
        feat_axis = 0
        bytes_accessed = n_j * B * D * xb + D * D * wb + D * 4 + B * D * xb

    cost = pl.CostEstimate(
        flops=2 * B * D * D + 8 * B * D,
        transcendentals=2 * B * D,          # exp + approx reciprocal
        bytes_accessed=bytes_accessed,
    )

    return pl.pallas_call(
        functools.partial(res_layer_kernel, feat_axis=feat_axis),
        out_shape=jax.ShapeDtypeStruct((B, D), x.dtype),
        grid_spec=pltpu.PrefetchScalarGridSpec(
            num_scalar_prefetch=0,
            grid=grid,
            in_specs=in_specs,
            out_specs=out_specs,
        ),
        compiler_params=pltpu.CompilerParams(
            dimension_semantics=dims,
            vmem_limit_bytes=int(budget),
        ),
        cost_estimate=cost,
    )(x, w, b2)


def res_layer(x, w, b, *, tb=None, tn=None, force_streamed=False):
    """x: [B, D], w: [D_out, D_in] (PyTorch Linear layout), b: [D_out]."""
    B, D = x.shape
    assert w.shape == (D, D) and b.shape == (D,)

    xbytes = jnp.dtype(x.dtype).itemsize
    wbytes = jnp.dtype(w.dtype).itemsize
    sub = _sublane(x.dtype)
    budget = _vmem_budget_bytes()
    b2 = b.reshape(1, D)

    streamed = force_streamed or (tn is not None and tn != D)
    order = "resident"

    if not streamed:
        auto_tb = _resident_plan(B, D, xbytes, wbytes, sub, budget)
        if auto_tb is None and tb is None:
            streamed = True  # weight too large to keep resident within budget
        else:
            tb = tb if tb is not None else (auto_tb or _batch_tile_candidates(B, sub)[-1])
            tn = D

    if streamed:
        if tb is None or tn is None:
            plan = _streamed_plan(B, D, xbytes, wbytes, sub, budget)
            if plan is None:
                # D not tileable below full width: best-effort resident fallback.
                tb = tb if tb is not None else _batch_tile_candidates(B, sub)[-1]
                tn = D
                streamed = False
            else:
                tb = tb if tb is not None else plan[0]
                tn = tn if tn is not None else plan[1]
        if streamed:
            n_i, n_j = B // tb, D // tn
            t_i_outer = B * D * xbytes + n_i * D * D * wbytes
            t_j_outer = n_j * B * D * xbytes + D * D * wbytes
            order = "i_outer" if t_i_outer <= t_j_outer else "j_outer"

    assert B % tb == 0 and D % tn == 0, (B, D, tb, tn)
    return _res_layer_call(x, w, b2, tb=tb, tn=tn, budget=budget, order=order)


# ------------------------------ reference -----------------------------------


def res_layer_ref(x, w, b):
    z = x @ w.T + b
    sp = jnp.where(z > 20.0, z, jnp.log1p(jnp.exp(jnp.minimum(z, 20.0))))
    return x + z * jnp.tanh(sp)


# --------------------------------- main -------------------------------------


if __name__ == "__main__":
    key = jax.random.PRNGKey(0)
    kx, kw, kb = jax.random.split(key, 3)

    def make(B, D):
        bound = 1.0 / jnp.sqrt(jnp.float32(D))
        x = jax.random.normal(kx, (B, D), dtype=jnp.float32)
        w = jax.random.uniform(kw, (D, D), minval=-bound, maxval=bound,
                               dtype=jnp.float32)
        b = jax.random.uniform(kb, (D,), minval=-bound, maxval=bound,
                               dtype=jnp.float32)
        return x, w, b

    # 1) Resident-weight plan (typical hidden size, weight stays in VMEM).
    x, w, b = make(16, 128)
    out = jax.block_until_ready(res_layer(x, w, b))
    assert jnp.allclose(out, res_layer_ref(x, w, b), atol=1e-2, rtol=1e-2), \
        "resident path mismatch"

    # 2) Streamed plan, batch-outer order (weight tiles re-read, x read once).
    x, w, b = make(64, 256)
    out = jax.block_until_ready(res_layer(x, w, b, force_streamed=True))
    assert jnp.allclose(out, res_layer_ref(x, w, b), atol=1e-2, rtol=1e-2), \
        "streamed i-outer path mismatch"

    # 3) Streamed plan, feature-outer order (weight read once, x tiles re-read).
    x, w, b = make(128, 256)
    out = jax.block_until_ready(
        res_layer(x, w, b, force_streamed=True, tb=32, tn=128))
    assert jnp.allclose(out, res_layer_ref(x, w, b), atol=1e-2, rtol=1e-2), \
        "streamed j-outer path mismatch"

    print("KERNEL_OK")
</pallas_src>

<mosaic_0001>
module attributes {stable_mosaic.version = 11 : i64} {
  func.func @res_layer_kernel(%arg0: i32, %arg1: memref<16x128xf32, #tpu.memory_space<vmem>>, %arg2: memref<128x128xf32, #tpu.memory_space<vmem>>, %arg3: memref<1x128xf32, #tpu.memory_space<vmem>>, %arg4: memref<16x128xf32, #tpu.memory_space<vmem>>) attributes {dimension_semantics = [#tpu.dimension_semantics<parallel>], iteration_bounds = array<i64: 1>, scalar_prefetch = 0 : i64, scratch_operands = 0 : i64, tpu.core_type = #tpu.core_type<tc>, window_params = [{transform_indices = @transform_0, window_bounds = array<i64: 16, 128>}, {pipeline_mode = #tpu.pipeline_mode<synchronous>, transform_indices = @transform_1, window_bounds = array<i64: 128, 128>}, {pipeline_mode = #tpu.pipeline_mode<synchronous>, transform_indices = @transform_2, window_bounds = array<i64: 1, 128>}, {transform_indices = @transform_3, window_bounds = array<i64: 16, 128>}]} {
    %c0 = arith.constant 0 : index
    %c0_0 = arith.constant 0 : index
    %0 = vector.load %arg1[%c0, %c0_0] : memref<16x128xf32, #tpu.memory_space<vmem>>, vector<16x128xf32>
    %c0_1 = arith.constant 0 : index
    %c0_2 = arith.constant 0 : index
    %1 = vector.load %arg2[%c0_1, %c0_2] : memref<128x128xf32, #tpu.memory_space<vmem>>, vector<128x128xf32>
    %cst = arith.constant dense<0.000000e+00> : vector<16x128xf32>
    %2 = tpu.matmul %0, %1, %cst {dimension_numbers = #tpu.dot_dimension_numbers<[1], [1], [0], [0], [0, 0, 1, 0], [], []>} : vector<16x128xf32>, vector<128x128xf32>, vector<16x128xf32> -> vector<16x128xf32>
    %c0_3 = arith.constant 0 : index
    %c0_4 = arith.constant 0 : index
    %3 = vector.load %arg3[%c0_3, %c0_4] : memref<1x128xf32, #tpu.memory_space<vmem>>, vector<1x128xf32>
    %4 = vector.broadcast %3 : vector<1x128xf32> to vector<16x128xf32>
    %5 = arith.addf %2, %4 : vector<16x128xf32>
    %cst_5 = arith.constant 2.000000e+01 : f32
    %6 = vector.broadcast %cst_5 : f32 to vector<16x128xf32>
    %7 = arith.minimumf %5, %6 : vector<16x128xf32>
    %8 = math.exp %7 : vector<16x128xf32>
    %cst_6 = arith.constant 2.000000e+00 : f32
    %9 = vector.broadcast %cst_6 : f32 to vector<16x128xf32>
    %10 = arith.addf %8, %9 : vector<16x128xf32>
    %11 = arith.mulf %8, %10 : vector<16x128xf32>
    %cst_7 = arith.constant 2.000000e+00 : f32
    %12 = vector.broadcast %cst_7 : f32 to vector<16x128xf32>
    %13 = arith.addf %11, %12 : vector<16x128xf32>
    %14 = tpu.reciprocal %13 {approx = true} : vector<16x128xf32> -> vector<16x128xf32>
    %15 = arith.mulf %11, %14 : vector<16x128xf32>
    %16 = arith.mulf %5, %15 : vector<16x128xf32>
    %17 = arith.addf %0, %16 : vector<16x128xf32>
    %c0_8 = arith.constant 0 : index
    %c0_9 = arith.constant 0 : index
    %18 = vector.load %arg4[%c0_8, %c0_9] : memref<16x128xf32, #tpu.memory_space<vmem>>, vector<16x128xf32>
    tpu.vector_store %arg4[%c0_8, %c0_9], %17 {strides = array<i32>} : memref<16x128xf32, #tpu.memory_space<vmem>>, vector<16x128xf32>,
    return
  }
  func.func @transform_0(%arg0: i32) -> (i32, i32) {
    %c0_i32 = arith.constant 0 : i32
    %c0_i32_0 = arith.constant 0 : i32
    return %arg0, %c0_i32 : i32, i32
  }
  func.func @transform_1(%arg0: i32) -> (i32, i32) {
    %c0_i32 = arith.constant 0 : i32
    %c0_i32_0 = arith.constant 0 : i32
    %c0_i32_1 = arith.constant 0 : i32
    return %c0_i32, %c0_i32_0 : i32, i32
  }
  func.func @transform_2(%arg0: i32) -> (i32, i32) {
    %c0_i32 = arith.constant 0 : i32
    %c0_i32_0 = arith.constant 0 : i32
    %c0_i32_1 = arith.constant 0 : i32
    return %c0_i32, %c0_i32_0 : i32, i32
  }
  func.func @transform_3(%arg0: i32) -> (i32, i32) {
    %c0_i32 = arith.constant 0 : i32
    %c0_i32_0 = arith.constant 0 : i32
    return %arg0, %c0_i32 : i32, i32
  }
}

</mosaic_0001>

<bundles_post_ra>
// kernel: tpu_custom_call.1
= control target key start
LH: loop header
LB: loop body
LE: loop exit
PB: predicated region body
PF: predicated region fallthrough
CT: control target
= control target key end

     0   :  { %8 = vsyncpa [#allocation3], 0  ;;  %s431_s0 = inlined_call_operand.hbm [shape: f32[16,128], index: 0, kind: input, shape index: {}]   ;;  %s432_s1 = inlined_call_operand.hbm [shape: f32[128,128], index: 1, kind: input, shape index: {}]   ;;  %s433_s2 = inlined_call_operand.vmem [shape: f32[1,128], index: 2, kind: input, shape index: {}]   ;;  %s434_s3 = inlined_call_operand.hbm [shape: f32[16,128], index: 3, kind: output, shape index: {}]  }
   0x1   :  { %9 = vsyncpa [#allocation6], 0 }
   0x2   :  { %10 = vsyncpa [#allocation4], 0  ;;  %s354_s12 = smov [#allocation2]   ;;  %s282_s16 = scalar_lea.hbm %s431_s0, 256 }
   0x3   :  { %s16_s13 = sshll.u32 %s354_s12, 4  ;;  %p283_p0 = scmp.ne.s32.totalorder %s431_s0, %s282_s16  ;;  %s17_s13 = int_to_ptr.vmem [resolvable:$true] %s16_s13 }
   0x4   :  { %p286_p1 = scmp.lt.u32.totalorder %s282_s16, %s431_s0 }
   0x6   :  { %p288_p2 = pnand %p286_p1, %p283_p0 }
   0x8   :  { %291 = shalt.err (!%p288_p2)
}
   0x9   :  { %s292_s21 = scalar_lea.vmem %s17_s13, 256  ;;  %p297_p4 = scmp.lt.s32.totalorder %s17_s13, %s17_s13 }
   0xa   :  { %p293_p3 = scmp.ne.s32.totalorder %s17_s13, %s292_s21  ;;  %p298_p5 = scmp.lt.s32.totalorder %s292_s21, %s292_s21 }
   0xc   :  { %p299_p6 = por %p298_p5, %p297_p4 }
   0xe   :  { %p300_p7 = pnand %p299_p6, %p293_p3 }
  0x10   :  { %303 = shalt.err (!%p300_p7)
}
  0x11   :  { %s355_s22 = smov 128   ;;  %s356_s23 = smov 8  }
  0x12   :  { %22 = dma.hbm_to_vmem [thread:$0]  %s431_s0, 256, %s17_s13, [#allocation3], %s355_s22, %s355_s22, %s356_s23  }
  0x13   :  { %s357_s26 = smov [#allocation5]   ;;  %s304_s30 = scalar_lea.hbm %s432_s1, 2048 }
  0x14   :  { %s28_s27 = sshll.u32 %s357_s26, 4  ;;  %p305_p8 = scmp.ne.s32.totalorder %s432_s1, %s304_s30  ;;  %s29_s27 = int_to_ptr.vmem [resolvable:$true] %s28_s27 }
  0x15   :  { %p308_p9 = scmp.lt.u32.totalorder %s304_s30, %s432_s1 }
  0x17   :  { %p310_p10 = pnand %p308_p9, %p305_p8 }
  0x19   :  { %313 = shalt.err (!%p310_p10)
}
  0x1a   :  { %s314_s8 = scalar_lea.vmem %s29_s27, 2048  ;;  %p319_p12 = scmp.lt.s32.totalorder %s29_s27, %s29_s27 }
  0x1b   :  { %p315_p11 = scmp.ne.s32.totalorder %s29_s27, %s314_s8  ;;  %p320_p13 = scmp.lt.s32.totalorder %s314_s8, %s314_s8 }
  0x1d   :  { %p321_p0 = por %p320_p13, %p319_p12 }
  0x1f   :  { %p322_p1 = pnand %p321_p0, %p315_p11 }
  0x21   :  { %325 = shalt.err (!%p322_p1)
}
  0x22   :  { %34 = dma.hbm_to_vmem [thread:$0]  %s432_s1, 2048, %s29_s27, [#allocation6], %s355_s22, %s355_s22, %s356_s23  }
  0x23   :  { %348 = dma.done.wait [#allocation3], 256  }
  0x24   :  { %349 = vsyncadd [#allocation3], 4294967040 }
  0x25   :  { %350 = dma.done.wait [#allocation6], 2048  }
  0x26   :  { %351 = vsyncadd [#allocation6], 4294965248  ;;  %v45_v0 = vld [vmem:[#allocation5] sm:$0xff]  ;;  %v46_v1 = vld [vmem:[#allocation5 + $0x8] sm:$0xff] }
  0x27   :  { %v47_v2 = vld [vmem:[#allocation5 + $0x10] sm:$0xff]  ;;  %v237_v3 = vpack.c.bf16 %v46_v1, %v45_v0  ;;  %v48_v4 = vld [vmem:[#allocation5 + $0x18] sm:$0xff]  ;;  %v49_v7 = vld [vmem:[#allocation5 + $0x20] sm:$0xff] }
  0x28   :  { %v241_v5 = vpack.c.bf16 %v48_v4, %v47_v2  ;;  %v409_v6 = vld [vmem:[#allocation2] sm:$0xff]  ;;  %v50_v8 = vld [vmem:[#allocation5 + $0x28] sm:$0xff]  ;;  %v52_v11 = vld [vmem:[#allocation5 + $0x38] sm:$0xff] }
  0x29   :  { %238 = vmatprep.subr.bf16.mxu0 %v237_v3  ;;  %234 = vmatprep.mubr.f32.mxu0 %v409_v6  ;;  %v245_v9 = vpack.c.bf16 %v50_v8, %v49_v7  ;;  %v51_v10 = vld [vmem:[#allocation5 + $0x30] sm:$0xff]  ;;  %v53_v13 = vld [vmem:[#allocation5 + $0x40] sm:$0xff]  ;;  %v54_v14 = vld [vmem:[#allocation5 + $0x48] sm:$0xff] }
  0x2a   :  { %240 = vmatpush3.bf16.xpose.msra.mxu0 %v237_v3  ;;  %v249_v12 = vpack.c.bf16 %v52_v11, %v51_v10  ;;  %v253_v15 = vpack.c.bf16 %v54_v14, %v53_v13  ;;  %v55_v16 = vld [vmem:[#allocation5 + $0x50] sm:$0xff]  ;;  %v56_v17 = vld [vmem:[#allocation5 + $0x58] sm:$0xff]  ;;  %v57_v19 = vld [vmem:[#allocation5 + $0x60] sm:$0xff] }
  0x2b   :  { %242 = vmatprep.subr.bf16.mxu0 %v241_v5  ;;  %v257_v18 = vpack.c.bf16 %v56_v17, %v55_v16  ;;  %v58_v20 = vld [vmem:[#allocation5 + $0x68] sm:$0xff]  ;;  %v59_v22 = vld [vmem:[#allocation5 + $0x70] sm:$0xff]  ;;  %v60_v23 = vld [vmem:[#allocation5 + $0x78] sm:$0xff] }
  0x2c   :  { %v261_v21 = vpack.c.bf16 %v58_v20, %v57_v19  ;;  %v265_v24 = vpack.c.bf16 %v60_v23, %v59_v22  ;;  %v44_v25 = vld [vmem:[#allocation2 + $0x8] sm:$0xff]  ;;  %v183_v26 = vld [vmem:[%s433_s2] ss:$0 sm:$0xff]  ;;  %s358_s2 = smov [#allocation7]  }
  0x2d   :  { %s170_s11 = sshll.u32 %s358_s2, 4  ;;  %s171_s11 = int_to_ptr.vmem [resolvable:$true] %s170_s11 }
  0x2e   :  { %s326_s12 = scalar_lea.vmem %s171_s11, 256  ;;  %p331_p3 = scmp.lt.s32.totalorder %s171_s11, %s171_s11 }
  0x2f   :  { %p327_p2 = scmp.ne.s32.totalorder %s171_s11, %s326_s12  ;;  %p332_p4 = scmp.lt.s32.totalorder %s326_s12, %s326_s12 }
  0x31   :  { %p333_p5 = por %p332_p4, %p331_p3 }
  0x32   :  { %244 = vmatpush3.bf16.xpose.msra.mxu0 %v241_v5 }
  0x33   :  { %246 = vmatprep.subr.bf16.mxu0 %v245_v9  ;;  %p334_p6 = pnand %p333_p5, %p327_p2 }
  0x3a   :  { %248 = vmatpush3.bf16.xpose.msra.mxu0 %v245_v9 }
  0x3b   :  { %250 = vmatprep.subr.bf16.mxu0 %v249_v12 }
  0x42   :  { %252 = vmatpush3.bf16.xpose.msra.mxu0 %v249_v12 }
  0x43   :  { %254 = vmatprep.subr.bf16.mxu0 %v253_v15 }
  0x4a   :  { %256 = vmatpush3.bf16.xpose.msra.mxu0 %v253_v15 }
  0x4b   :  { %258 = vmatprep.subr.bf16.mxu0 %v257_v18 }
  0x52   :  { %260 = vmatpush3.bf16.xpose.msra.mxu0 %v257_v18 }
  0x53   :  { %262 = vmatprep.subr.bf16.mxu0 %v261_v21 }
  0x5a   :  { %264 = vmatpush3.bf16.xpose.msra.mxu0 %v261_v21 }
  0x5b   :  { %266 = vmatprep.subr.bf16.mxu0 %v265_v24 }
  0x62   :  { %268 = vmatpush3.bf16.xpose.msra.mxu0 %v265_v24 }
  0x69   :  { %235 = vmatmul.mubr.f32.vlgmr.msra.gmra.mrb[0].mxu0 %v44_v25 }
 0x13c   :  { %v236_v27 = vpop.f32.mrb[0].mxu0 }
 0x13d   :  { %v140_v28 = vadd.f32 %v236_v27, %v183_v26  ;;  %v134_v29 = vpop.f32.mrb[1].mxu0 }
 0x13e   :  { %v135_v30 = vadd.f32 %v183_v26, %v134_v29 }
 0x13f   :  { %v144_v31 = vmin.f32 %v140_v28, 20.0 }
 0x140   :  { %v143_v32 = vmin.f32 %v135_v30, 20.0 }
 0x141   :  { %v147_v33 = vmul.f32 1.442695, %v144_v31 }
 0x142   :  { %v145_v34 = vmul.f32 1.442695, %v143_v32 }
 0x143   :  { %274 = vpow2.f32 %v147_v33 }
 0x144   :  { %276 = vpow2.f32 %v145_v34 }
 0x14d   :  { %v275_v35 = vpop.eup %274 }
 0x14e   :  { %v277_v36 = vpop.eup %276  ;;  %v150_v37 = vadd.f32 2.0, %v275_v35 }
 0x14f   :  { %v149_v38 = vadd.f32 2.0, %v277_v36 }
 0x150   :  { %v152_v39 = vmul.f32 %v275_v35, %v150_v37 }
 0x151   :  { %v151_v40 = vmul.f32 %v277_v36, %v149_v38 }
 0x152   :  { %v154_v41 = vadd.f32 2.0, %v152_v39 }
 0x153   :  { %v153_v42 = vadd.f32 2.0, %v151_v40 }
 0x154   :  { %278 = vrcp.f32 %v154_v41 }
 0x155   :  { %280 = vrcp.f32 %v153_v42 }
 0x15e   :  { %v279_v43 = vpop.eup %278 }
 0x15f   :  { %v281_v44 = vpop.eup %280  ;;  %v158_v45 = vmul.f32 %v279_v43, %v152_v39 }
 0x160   :  { %v157_v46 = vmul.f32 %v281_v44, %v151_v40 }
 0x161   :  { %v160_v47 = vmul.f32 %v158_v45, %v140_v28 }
 0x162   :  { %v159_v48 = vmul.f32 %v157_v46, %v135_v30 }
 0x163   :  { %v162_v49 = vadd.f32 %v160_v47, %v44_v25 }
 0x164   :  { %v161_v50 = vadd.f32 %v159_v48, %v409_v6 }
 0x165   :  { %164 = vst [vmem:[#allocation7 + $0x8] sm:$0xff] %v162_v49 }
 0x166   :  { %163 = vst [vmem:[#allocation7] sm:$0xff] %v161_v50 }
 0x167   :  { %337 = shalt.err (!%p334_p6)
}
 0x168   :  { %s338_s15 = scalar_lea.hbm %s434_s3, 256 }
 0x169   :  { %p339_p7 = scmp.ne.s32.totalorder %s434_s3, %s338_s15  ;;  %p342_p8 = scmp.lt.u32.totalorder %s338_s15, %s434_s3 }
 0x16b   :  { %p344_p9 = pnand %p342_p8, %p339_p7 }
 0x16d   :  { %347 = shalt.err (!%p344_p9)
}
 0x16e   :  { %176 = dma.vmem_to_hbm [thread:$0]  %s171_s11, 256, %s434_s3, [#allocation4], %s355_s22, %s355_s22, %s356_s23  }
 0x16f   :  { %352 = dma.done.wait [#allocation4], 256  }
 0x170   :  { %353 = vsyncadd [#allocation4], 4294967040 }
 0x171   :  { %180 = vsyncpa [#allocation3], 1 }
 0x172   :  { %181 = vsyncpa [#allocation6], 1 }
 0x173   :  { %182 = vsyncpa [#allocation4], 1 }

</bundles_post_ra>
